<compile_context>
chip_gen: v6e
topology: v6e:2x2x1
jax: 0.10.0
libtpu: 0.0.40
codegen_flags: <defaults>
</compile_context>

<pallas_src>
import jax
import jax.numpy as jnp
from jax import lax
from jax.experimental import pallas as pl
from jax.experimental.pallas import tpu as pltpu

EPS = 1e-5
OUT_CHANNELS = 256


# ------------------------------ small helpers ------------------------------
def _bn_fold(gamma, beta, mean, var):
    """Fold inference BatchNorm into (scale (C,), shift (1, C))."""
    scale = gamma / jnp.sqrt(var + EPS)
    shift = beta - mean * scale
    return scale.astype(jnp.float32), shift.reshape(1, -1).astype(jnp.float32)


def _choose_row_tile(H, W, min_m=256):
    """Pick a row tile th so th*W >= min_m (fills the MXU M dim), balanced over
    H (no exact-divisor requirement), with th*W % 8 == 0 whenever more than one
    tile is used (sublane-aligned flattened blocks)."""
    th = min(H, max(1, -(-min_m // W)))     # ceil(min_m / W), capped at H
    n_tiles = -(-H // th)
    th = -(-H // n_tiles)                   # balance the tail tile
    if n_tiles > 1:
        while (th * W) % 8 != 0:
            th += 1
        n_tiles = -(-H // th)
    return th, n_tiles


# -------------------- Kernel A: 1x1 conv (+BN shift) + ReLU --------------------
def _pointwise_kernel(x_ref, w_ref, shift_ref, o_ref):
    acc = jnp.dot(x_ref[...], w_ref[...], preferred_element_type=jnp.float32)
    o_ref[...] = jnp.maximum(acc + shift_ref[...], 0.0).astype(o_ref.dtype)


def pointwise_conv_bn_relu(x_flat, w, shift, tq):
    """x_flat: (N, HWp, Cin) bf16; w: (Cin, C) bf16 (BN scale folded); shift: (1, C) f32."""
    N, HWp, Cin = x_flat.shape
    C = w.shape[1]
    return pl.pallas_call(
        _pointwise_kernel,
        out_shape=jax.ShapeDtypeStruct((N, HWp, C), jnp.bfloat16),
        grid_spec=pltpu.PrefetchScalarGridSpec(
            num_scalar_prefetch=0,
            grid=(N, HWp // tq),
            in_specs=[
                pl.BlockSpec((None, tq, Cin), lambda n, i: (n, i, 0)),
                pl.BlockSpec((Cin, C), lambda n, i: (0, 0)),
                pl.BlockSpec((1, C), lambda n, i: (0, 0)),
            ],
            out_specs=pl.BlockSpec((None, tq, C), lambda n, i: (n, i, 0)),
        ),
        compiler_params=pltpu.CompilerParams(
            dimension_semantics=("parallel", "parallel")),
    )(x_flat, w, shift)


# ---------- Kernel B: 3x3 dilated conv (+BN shift) + ReLU, row-tiled grid ----------
def _make_dilated_kernel(W, Cin, Cout, d, dmax, th):
    rows_in = th + 2 * d          # halo'd row window for this dilation
    cols_in = W + 2 * d           # only the columns this rate needs
    off = dmax - d                # offset of this rate inside the shared dmax pad

    def kernel(xp_hbm, w_ref, shift_ref, o_ref, buf, sem):
        n = pl.program_id(0)
        i = pl.program_id(1)
        n_tiles = pl.num_programs(1)

        def slab_copy(row_tile, slot):
            return pltpu.make_async_copy(
                xp_hbm.at[n, pl.ds(row_tile * th + off, rows_in),
                          pl.ds(off, cols_in)],
                buf.at[slot],
                sem.at[slot],
            )

        @pl.when(i == 0)                      # prime the double buffer per image
        def _():
            slab_copy(0, 0).start()

        slot = lax.rem(i, 2)
        slab_copy(i, slot).wait()

        @pl.when(i + 1 < n_tiles)             # prefetch the next row tile (same image)
        def _():
            slab_copy(i + 1, 1 - slot).start()

        xb = buf[slot]                        # (rows_in, cols_in, Cin) bf16 -- no upcast
        # 9-tap matmul: accumulate in a local f32 value, store once.
        # TODO(synk): tile the Cin reduction for very large Cin (v7x VMEM budget).
        acc = None
        for ky in range(3):
            for kx in range(3):
                tap = xb[ky * d:ky * d + th, kx * d:kx * d + W, :]
                part = jnp.dot(tap.reshape(th * W, Cin), w_ref[ky, kx],
                               preferred_element_type=jnp.float32)
                acc = part if acc is None else acc + part
        y = jnp.maximum(acc + shift_ref[...], 0.0)
        o_ref[...] = y.reshape(th, W, Cout).astype(o_ref.dtype)

    return kernel


def dilated_conv_bn_relu(xp, w, shift, *, d, dmax, W, th, n_tiles):
    """xp: (N, Hp+2*dmax, W+2*dmax, Cin) bf16 (shared pad); w: (3,3,Cin,C) bf16."""
    N = xp.shape[0]
    Cin = xp.shape[-1]
    C = w.shape[-1]
    Hp = n_tiles * th
    kernel = _make_dilated_kernel(W, Cin, C, d=d, dmax=dmax, th=th)
    return pl.pallas_call(
        kernel,
        out_shape=jax.ShapeDtypeStruct((N, Hp, W, C), jnp.bfloat16),
        grid_spec=pltpu.PrefetchScalarGridSpec(
            num_scalar_prefetch=0,
            grid=(N, n_tiles),
            in_specs=[
                pl.BlockSpec(memory_space=pl.ANY),                  # xp stays in HBM
                pl.BlockSpec((3, 3, Cin, C), lambda n, i: (0, 0, 0, 0)),
                pl.BlockSpec((1, C), lambda n, i: (0, 0)),
            ],
            out_specs=pl.BlockSpec((None, th, W, C), lambda n, i: (n, i, 0, 0)),
            scratch_shapes=[
                pltpu.VMEM((2, th + 2 * d, W + 2 * d, Cin), xp.dtype),  # halo DB
                pltpu.SemaphoreType.DMA((2,)),
            ],
        ),
        compiler_params=pltpu.CompilerParams(
            dimension_semantics=("parallel", "arbitrary"),
            vmem_limit_bytes=64 * 1024 * 1024),
    )(xp, w, shift)


# ------- Kernel C: fused projection over the (virtual) 5-branch concat -------
def _proj_kernel(b0_ref, b1_ref, b2_ref, b3_ref, pshift_ref, w_ref, o_ref):
    acc = jnp.dot(b0_ref[...], w_ref[0], preferred_element_type=jnp.float32)
    acc = acc + jnp.dot(b1_ref[...], w_ref[1], preferred_element_type=jnp.float32)
    acc = acc + jnp.dot(b2_ref[...], w_ref[2], preferred_element_type=jnp.float32)
    acc = acc + jnp.dot(b3_ref[...], w_ref[3], preferred_element_type=jnp.float32)
    # pooling-branch contribution + projection BN shift (spatially constant).
    o_ref[...] = jnp.maximum(acc + pshift_ref[...], 0.0).astype(o_ref.dtype)


def fused_projection(b0, b1, b2, b3, pshift, w_stack, tq):
    N, HWp, C = b0.shape
    bspec = pl.BlockSpec((None, tq, C), lambda n, i: (n, i, 0))
    return pl.pallas_call(
        _proj_kernel,
        out_shape=jax.ShapeDtypeStruct((N, HWp, C), jnp.bfloat16),
        grid_spec=pltpu.PrefetchScalarGridSpec(
            num_scalar_prefetch=0,
            grid=(N, HWp // tq),
            in_specs=[
                bspec, bspec, bspec, bspec,
                pl.BlockSpec((None, 1, C), lambda n, i: (n, 0, 0)),
                pl.BlockSpec((4, C, C), lambda n, i: (0, 0, 0)),
            ],
            out_specs=pl.BlockSpec((None, tq, C), lambda n, i: (n, i, 0)),
        ),
        compiler_params=pltpu.CompilerParams(
            dimension_semantics=("parallel", "parallel")),
    )(b0, b1, b2, b3, pshift, w_stack)


# ------------------------------- parameter init -------------------------------
def init_aspp_params(key, in_channels, atrous_rates, out_channels=OUT_CHANNELS):
    keys = jax.random.split(key, 12)

    def bn(k):
        k1, k2, k3, k4 = jax.random.split(k, 4)
        gamma = 1.0 + 0.1 * jax.random.normal(k1, (out_channels,), jnp.float32)
        beta = 0.1 * jax.random.normal(k2, (out_channels,), jnp.float32)
        mean = 0.1 * jax.random.normal(k3, (out_channels,), jnp.float32)
        var = 1.0 + 0.1 * jnp.abs(jax.random.normal(k4, (out_channels,), jnp.float32))
        return gamma, beta, mean, var

    p = {"rates": tuple(int(r) for r in atrous_rates)}
    # weights stored pre-transposed: 1x1 -> (Cin, Cout); 3x3 -> (Kh, Kw, Cin, Cout)
    p["w0"] = 0.1 * jax.random.normal(keys[0], (in_channels, out_channels), jnp.float32)
    p["bn0"] = bn(keys[1])
    for i in range(3):
        p[f"w{i+1}"] = 0.1 * jax.random.normal(
            keys[2 + 2 * i], (3, 3, in_channels, out_channels), jnp.float32)
        p[f"bn{i+1}"] = bn(keys[3 + 2 * i])
    p["w_pool"] = 0.1 * jax.random.normal(keys[8], (in_channels, out_channels), jnp.float32)
    p["bn_pool"] = bn(keys[9])
    p["w_proj"] = 0.05 * jax.random.normal(keys[10], (5 * out_channels, out_channels), jnp.float32)
    p["bn_proj"] = bn(keys[11])
    return p


# ------------------------------- ASPP forward -------------------------------
def aspp_forward(x_nchw, params):
    N, Cin, H, W = x_nchw.shape
    C = OUT_CHANNELS
    HW = H * W
    rates = tuple(int(r) for r in params["rates"])
    dmax = max(rates)

    th, n_tiles = _choose_row_tile(H, W)   # row tile shared by all kernels
    Hp = n_tiles * th                      # padded row count (tail rows sliced off)
    tq = th * W                            # flattened-spatial tile (aligned to rows)
    HWp = Hp * W

    # Single NCHW->NHWC transpose straight to bf16 (no intermediate f32 NHWC copy).
    x_bf = jnp.transpose(x_nchw, (0, 2, 3, 1)).astype(jnp.bfloat16)

    # branch 0: 1x1 conv + BN + ReLU (BN scale folded into the weight).
    s0, sh0 = _bn_fold(*params["bn0"])
    w0 = (params["w0"] * s0[None, :]).astype(jnp.bfloat16)
    x_rows = x_bf if Hp == H else jnp.pad(x_bf, ((0, 0), (0, Hp - H), (0, 0), (0, 0)))
    x_flat = x_rows.reshape(N, HWp, Cin)
    spatial = [pointwise_conv_bn_relu(x_flat, w0, sh0, tq)]

    # branches 1-3: dilated 3x3 convs sharing a single max-rate padded copy.
    xp = jnp.pad(x_bf, ((0, 0), (dmax, dmax + (Hp - H)), (dmax, dmax), (0, 0)))
    for i, d in enumerate(rates):
        s, sh = _bn_fold(*params[f"bn{i+1}"])
        w = (params[f"w{i+1}"] * s).astype(jnp.bfloat16)
        y = dilated_conv_bn_relu(xp, w, sh, d=d, dmax=dmax, W=W, th=th, n_tiles=n_tiles)
        spatial.append(y.reshape(N, HWp, C))        # free row-major reshape

    # branch 4 (ASPPPooling): global-avg-pool straight from the NCHW f32 input
    # + 1x1 conv (+BN when N>1, matching the module's forward) + ReLU.
    pooled = jnp.mean(x_nchw.astype(jnp.float32), axis=(2, 3))        # (N, Cin)
    y_pool = pooled @ params["w_pool"]                                # (N, C)
    if N > 1:
        s, sh = _bn_fold(*params["bn_pool"])
        y_pool = y_pool * s[None, :] + sh
    y_pool = jnp.maximum(y_pool, 0.0)

    # Fused projection: 1x1 conv over the virtual 5-way concat + BN + ReLU.
    sP, shP = _bn_fold(*params["bn_proj"])
    w_proj = params["w_proj"] * sP[None, :]                           # (5C, C)
    w_stack = w_proj[:4 * C].reshape(4, C, C).astype(jnp.bfloat16)
    # Pooling branch is spatially constant: its projection contribution becomes a
    # per-image (1, C) shift (bilinear upsample from a 1x1 map == broadcast).
    pshift = (y_pool @ w_proj[4 * C:] + shP).reshape(N, 1, C).astype(jnp.float32)

    out = fused_projection(spatial[0], spatial[1], spatial[2], spatial[3],
                           pshift, w_stack, tq)
    # TODO(synk): nn.Dropout(0.1) is identity in eval mode; not applied here.
    if HWp != HW:
        out = out[:, :HW]
    out = out.reshape(N, H, W, C)
    return jnp.transpose(out, (0, 3, 1, 2)).astype(jnp.float32)        # NCHW f32


if __name__ == "__main__":
    key = jax.random.PRNGKey(0)
    in_channels = 4
    atrous_rates = (1, 2, 3)
    N, H, W = 2, 16, 16

    k_x, k_p = jax.random.split(key)
    x = jax.random.normal(k_x, (N, in_channels, H, W), jnp.float32)
    params = init_aspp_params(k_p, in_channels, atrous_rates)

    out = jax.block_until_ready(aspp_forward(x, params))
    assert out.shape == (N, OUT_CHANNELS, H, W), out.shape
    assert bool(jnp.all(jnp.isfinite(out)))
    print("KERNEL_OK")
</pallas_src>

<mosaic_0001>
module attributes {stable_mosaic.version = 11 : i64} {
  func.func @_pointwise_kernel(%arg0: i32, %arg1: i32, %arg2: memref<1x256x4xbf16, #tpu.memory_space<vmem>>, %arg3: memref<4x256xbf16, #tpu.memory_space<vmem>>, %arg4: memref<1x256xf32, #tpu.memory_space<vmem>>, %arg5: memref<1x256x256xbf16, #tpu.memory_space<vmem>>) attributes {dimension_semantics = [#tpu.dimension_semantics<parallel>, #tpu.dimension_semantics<parallel>], iteration_bounds = array<i64: 2, 1>, scalar_prefetch = 0 : i64, scratch_operands = 0 : i64, tpu.core_type = #tpu.core_type<tc>, window_params = [{transform_indices = @transform_0, window_bounds = array<i64: 1, 256, 4>}, {pipeline_mode = #tpu.pipeline_mode<synchronous>, transform_indices = @transform_1, window_bounds = array<i64: 4, 256>}, {pipeline_mode = #tpu.pipeline_mode<synchronous>, transform_indices = @transform_2, window_bounds = array<i64: 1, 256>}, {transform_indices = @transform_3, window_bounds = array<i64: 1, 256, 256>}]} {
    %c0 = arith.constant 0 : index
    %c0_0 = arith.constant 0 : index
    %c0_1 = arith.constant 0 : index
    %0 = vector.load %arg2[%c0, %c0_0, %c0_1] : memref<1x256x4xbf16, #tpu.memory_space<vmem>>, vector<1x256x4xbf16>
    %1 = vector.shape_cast %0 : vector<1x256x4xbf16> to vector<256x4xbf16>
    %c0_2 = arith.constant 0 : index
    %c0_3 = arith.constant 0 : index
    %2 = vector.load %arg3[%c0_2, %c0_3] : memref<4x256xbf16, #tpu.memory_space<vmem>>, vector<4x256xbf16>
    %cst = arith.constant dense<0.000000e+00> : vector<256x256xf32>
    %3 = tpu.matmul %1, %2, %cst {dimension_numbers = #tpu.dot_dimension_numbers<[1], [0], [0], [1], [0, 0, 1, 1], [], []>} : vector<256x4xbf16>, vector<4x256xbf16>, vector<256x256xf32> -> vector<256x256xf32>
    %c0_4 = arith.constant 0 : index
    %c0_5 = arith.constant 0 : index
    %4 = vector.load %arg4[%c0_4, %c0_5] : memref<1x256xf32, #tpu.memory_space<vmem>>, vector<1x256xf32>
    %5 = vector.broadcast %4 : vector<1x256xf32> to vector<256x256xf32>
    %6 = arith.addf %3, %5 : vector<256x256xf32>
    %cst_6 = arith.constant 0.000000e+00 : f32
    %7 = vector.broadcast %cst_6 : f32 to vector<256x256xf32>
    %8 = arith.maximumf %6, %7 : vector<256x256xf32>
    %9 = arith.truncf %8 : vector<256x256xf32> to vector<256x256xbf16>
    %c0_7 = arith.constant 0 : index
    %c0_8 = arith.constant 0 : index
    %c0_9 = arith.constant 0 : index
    %10 = vector.load %arg5[%c0_7, %c0_8, %c0_9] : memref<1x256x256xbf16, #tpu.memory_space<vmem>>, vector<1x256x256xbf16>
    %11 = vector.shape_cast %10 : vector<1x256x256xbf16> to vector<256x256xbf16>
    %12 = vector.shape_cast %9 : vector<256x256xbf16> to vector<1x256x256xbf16>
    tpu.vector_store %arg5[%c0_7, %c0_8, %c0_9], %12 {strides = array<i32>} : memref<1x256x256xbf16, #tpu.memory_space<vmem>>, vector<1x256x256xbf16>,
    return
  }
  func.func @transform_0(%arg0: i32, %arg1: i32) -> (i32, i32, i32) {
    %c0_i32 = arith.constant 0 : i32
    %c0_i32_0 = arith.constant 0 : i32
    return %arg0, %arg1, %c0_i32 : i32, i32, i32
  }
  func.func @transform_1(%arg0: i32, %arg1: i32) -> (i32, i32) {
    %c0_i32 = arith.constant 0 : i32
    %c0_i32_0 = arith.constant 0 : i32
    %c0_i32_1 = arith.constant 0 : i32
    return %c0_i32, %c0_i32_0 : i32, i32
  }
  func.func @transform_2(%arg0: i32, %arg1: i32) -> (i32, i32) {
    %c0_i32 = arith.constant 0 : i32
    %c0_i32_0 = arith.constant 0 : i32
    %c0_i32_1 = arith.constant 0 : i32
    return %c0_i32, %c0_i32_0 : i32, i32
  }
  func.func @transform_3(%arg0: i32, %arg1: i32) -> (i32, i32, i32) {
    %c0_i32 = arith.constant 0 : i32
    %c0_i32_0 = arith.constant 0 : i32
    return %arg0, %arg1, %c0_i32 : i32, i32, i32
  }
}

</mosaic_0001>

<bundles_post_ra>
// kernel: tpu_custom_call.1
= control target key start
LH: loop header
LB: loop body
LE: loop exit
PB: predicated region body
PF: predicated region fallthrough
CT: control target
= control target key end

     0   :  { %8 = vsyncpa [#allocation3], 0  ;;  %s1520_s0 = inlined_call_operand.vmem [shape: bf16[2,256,4], index: 0, kind: input, shape index: {}]   ;;  %s1521_s1 = inlined_call_operand.vmem [shape: bf16[4,256], index: 1, kind: input, shape index: {}]   ;;  %s1522_s2 = inlined_call_operand.vmem [shape: f32[1,256], index: 2, kind: input, shape index: {}]   ;;  %s1523_s3 = inlined_call_operand.hbm [shape: bf16[2,256,256], index: 3, kind: output, shape index: {}]  }
   0x1   :  { %10 = vsyncpa [#allocation3 + $0x1], 0  ;;  %s1259_s12 = smov 0   ;;  %s1261_s13 = smov 0  }
   0x2   :  { %s1263_s14 = smov 0   ;;  %s1265_s15 = smov 0  }
   0x3   :  { %s1267_s16 = smov 0   ;;  %s1269_s17 = smov 0  }
   0x4 LB: > { %s968_s18 = sadd.s32 4294967295, %s1233_s17   ;;  %s969_s19 = sadd.s32 4294967294, %s1233_s17   ;;  %s1233_s17 = sphi %s1269_s17, %s16_s17   ;;  %s1229_s16 = sphi %s1267_s16, %s1530_s16   ;;  %s1225_s15 = sphi %s1265_s15, %s1529_s15   ;;  %s1221_s14 = sphi %s1263_s14, %s1528_s14   ;;  %s1217_s13 = sphi %s1261_s13, %s1527_s13   ;;  %s1213_s12 = sphi %s1259_s12, %s1526_s12  }
   0x5   : > { %s28_s20 = sadd.s32 1, %s1229_s16  ;;  %s107_s21 = sadd.s32 1, %s1221_s14 }
   0x6   : > { %p30_p0 = scmp.ge.s32.totalorder %s28_s20, 2  ;;  %p117_p1 = scmp.ne.s32.totalorder %s1221_s14, %s1217_s13 }
   0x7   : > { %p118_p2 = scmp.eq.s32.totalorder %s968_s18, 1  ;;  %p123_p3 = scmp.ne.s32.totalorder %s1217_s13, %s1213_s12 }
   0x8   : > { %s1532_s20 = smov (%p30_p0, %s28_s20), 0  ;;  %p124_p5 = scmp.eq.s32.totalorder %s969_s19, 1 }
   0x9   : > { %p1299_p4 = por %p118_p2, %p117_p1  ;;  %s102_s23 = ssub.s32 %s1229_s16, %s1532_s20 }
   0xa   : > { %p972_p6 = scmp.ge.s32.totalorder %s1233_s17, 1  ;;  %p105_p7 = scmp.eq.s32.totalorder %s102_s23, 0 }
   0xb   : > { %p1306_p8 = por %p124_p5, %p123_p3  ;;  %p161_p9 = scmp.lt.s32.totalorder %s1233_s17, 3 }
   0xc   : > { %s1312_s25 = scalar_select %p105_p7, %s1221_s14, %s107_s21  }
   0xd   : > { %p162_p10 = pnand %p972_p6, %p161_p9 }
   0xe   : > { %p190_p11 = scmp.lt.s32.totalorder (!%p162_p10), %s1225_s15, 1  ;;  %s186_s8 = sand.u32 (!%p162_p10), 1, %s1217_s13  }
   0xf   : > { %165 = sbr.rel (%p162_p10) target bundleno = 302 (0x12e), region = 32  ;;  %s973_s9 = sshll.u32 (!%p162_p10), %s186_s8, 8 }
  0x10   : > { %s1374_s10 = scalar_lea.vmem (!%p162_p10), [#allocation2], %s973_s9  ;;  %s1080_s11 = sshll.u32 (!%p162_p10), %s1225_s15, 12 }
  0x11   : > { %s889_s18 = sshll.u32 (!%p162_p10), %s1374_s10, 4  ;;  %s1467_s23 = scalar_lea.hbm (!%p162_p10), %s1523_s3, %s1080_s11  ;;  %s1469_s18 = int_to_ptr.vmem [resolvable:$true] %s889_s18 }
  0x12   : > { %s1157_s26 = scalar_lea.vmem (!%p162_p10), %s1469_s18, 4096  ;;  %s1236_s27 = smov (!%p162_p10), [#allocation2]  }
  0x13   : > { %p1158_p12 = scmp.ne.s32.totalorder (!%p162_p10), %s1469_s18, %s1157_s26 }
  0x14   : > { %v992_v0 = vld.sshfl [vmem:[%s1521_s1] sm:$0x33 pattern:$0x76325410]  ;;  %vm384_vm0 = vcmask 1041408   ;;  %v1235_v3 = vmov 0   ;;  %v236_v20 = vlaneseq }
  0x15   : > { %v334_v1 = vcombine.high %v992_v0, %v992_v0  ;;  %v386_v2 = vsel %vm384_vm0, %v992_v0, 0  ;;  %423 = vmatprep.mubr.bf16.mxu0 %v1235_v3  ;;  %503 = vmatprep.mubr.bf16.mxu1 %v1235_v3  ;;  %s191_s28 = scalar_select %p190_p11, %s1225_s15, 1  ;;  %vm335_vm1 = vcmask 31744   ;;  %v234_v23 = vld [vmem:[%s1522_s2] sm:$0x3] }
  0x16   : > { %v237_v21 = vshrl.u32 %v236_v20, 7  ;;  %s1475_s15 = scalar_lea.sflag [#allocation3], %s186_s8  ;;  %p1159_p13 = pnand %p1158_p12, %p1299_p4 }
  0x17   : > { %993 = vmatprep.subr.msk.bf16.mxu0 %vm384_vm0, %v334_v1  ;;  %1081 = vmatprep.subr.msk.bf16.mxu1 %vm384_vm0, %v334_v1  ;;  %s1047_s29 = sshll.u32 %s191_s28, 7  ;;  %s1161_s28 = sshll.u32 %s1236_s27, 4  ;;  %s1162_s28 = int_to_ptr.vmem [resolvable:$false] %s1161_s28 }
  0x18   : > { %406 = vmatpush1.bf16.msra.mxu0 %v386_v2  ;;  %1082 = vmatpush1.bf16.msra.mxu1 %v386_v2  ;;  %s1322_s5 = scalar_lea.vmem %s1520_s0, %s1047_s29  ;;  %v238_v22 = vsub.s32 0, %v237_v21  ;;  %v242_v24 = vsub.s32 1, %v237_v21  ;;  %p1160_p0 = pneg %p1159_p13 }
  0x19   : > { %v1141_v4 = vld [vmem:[%s1322_s5] sm:$0xff]   ;;  %v1143_v6 = vld [vmem:[%s1322_s5 + $0x8] sm:$0xff]   ;;  %v1145_v8 = vld [vmem:[%s1322_s5 + $0x10] sm:$0xff]   ;;  %s1163_s29 = scalar_lea.vmem %s1162_s28, 8192  ;;  %p1164_p1 = scmp.lt.s32.totalorder %s1469_s18, %s1162_s28 }
  0x1a   : > { %v1142_v5 = vld [vmem:[%s1322_s5 + $0x40] sm:$0xff]   ;;  %v1144_v7 = vld [vmem:[%s1322_s5 + $0x48] sm:$0xff]   ;;  %v1146_v9 = vld [vmem:[%s1322_s5 + $0x50] sm:$0xff]   ;;  %v1359_v25 = vrot.slane %v234_v23, %v238_v22  ;;  %v1361_v26 = vrot.slane %v234_v23, %v242_v24  ;;  %p1165_p2 = scmp.lt.s32.totalorder %s1163_s29, %s1157_s26 }
  0x1b   : > { %994 = vmatmul.mubr.msk.bf16.vlgmr.msra.gmra.mxu0 %vm335_vm1, %v1141_v4  ;;  %1002 = vmatmul.mubr.msk.bf16.vlgmr.msra.gmra.mxu1 %vm335_vm1, %v1142_v5  ;;  %v1147_v10 = vld [vmem:[%s1322_s5 + $0x18] sm:$0xff]   ;;  %v1149_v12 = vld [vmem:[%s1322_s5 + $0x20] sm:$0xff]   ;;  %v1151_v14 = vld [vmem:[%s1322_s5 + $0x28] sm:$0xff]  }
  0x1c   : > { %433 = vmatprep.mubr.bf16.mxu0 %v1235_v3  ;;  %513 = vmatprep.mubr.bf16.mxu1 %v1235_v3  ;;  %v1148_v11 = vld [vmem:[%s1322_s5 + $0x58] sm:$0xff]   ;;  %v1150_v13 = vld [vmem:[%s1322_s5 + $0x60] sm:$0xff]   ;;  %v1152_v15 = vld [vmem:[%s1322_s5 + $0x68] sm:$0xff]   ;;  %p1166_p3 = por %p1165_p2, %p1164_p1 }
  0x1d   : > { %v1153_v16 = vld [vmem:[%s1322_s5 + $0x30] sm:$0xff]   ;;  %v1155_v18 = vld [vmem:[%s1322_s5 + $0x38] sm:$0xff]  }
  0x1e   : > { %v1154_v17 = vld [vmem:[%s1322_s5 + $0x70] sm:$0xff]   ;;  %v1156_v19 = vld [vmem:[%s1322_s5 + $0x78] sm:$0xff]   ;;  %p1167_p5 = pnand %p1166_p3, %p1160_p0 }
  0x23   : > { %995 = vmatmul.mubr.msk.bf16.gmra.mxu0 %vm335_vm1, %v1143_v6  ;;  %1003 = vmatmul.mubr.msk.bf16.gmra.mxu1 %vm335_vm1, %v1144_v7 }
  0x24   : > { %443 = vmatprep.mubr.bf16.mxu0 %v1235_v3  ;;  %523 = vmatprep.mubr.bf16.mxu1 %v1235_v3 }
  0x2b   : > { %996 = vmatmul.mubr.msk.bf16.gmra.mxu0 %vm335_vm1, %v1145_v8  ;;  %1004 = vmatmul.mubr.msk.bf16.gmra.mxu1 %vm335_vm1, %v1146_v9 }
  0x2c   : > { %453 = vmatprep.mubr.bf16.mxu0 %v1235_v3  ;;  %533 = vmatprep.mubr.bf16.mxu1 %v1235_v3 }
  0x33   : > { %997 = vmatmul.mubr.msk.bf16.gmra.mxu0 %vm335_vm1, %v1147_v10  ;;  %1005 = vmatmul.mubr.msk.bf16.gmra.mxu1 %vm335_vm1, %v1148_v11 }
  0x34   : > { %463 = vmatprep.mubr.bf16.mxu0 %v1235_v3  ;;  %543 = vmatprep.mubr.bf16.mxu1 %v1235_v3 }
  0x3b   : > { %998 = vmatmul.mubr.msk.bf16.gmra.mxu0 %vm335_vm1, %v1149_v12  ;;  %1006 = vmatmul.mubr.msk.bf16.gmra.mxu1 %vm335_vm1, %v1150_v13 }
  0x3c   : > { %473 = vmatprep.mubr.bf16.mxu0 %v1235_v3  ;;  %553 = vmatprep.mubr.bf16.mxu1 %v1235_v3 }
  0x43   : > { %999 = vmatmul.mubr.msk.bf16.gmra.mxu0 %vm335_vm1, %v1151_v14  ;;  %1007 = vmatmul.mubr.msk.bf16.gmra.mxu1 %vm335_vm1, %v1152_v15 }
  0x44   : > { %483 = vmatprep.mubr.bf16.mxu0 %v1235_v3  ;;  %563 = vmatprep.mubr.bf16.mxu1 %v1235_v3 }
  0x4b   : > { %1000 = vmatmul.mubr.msk.bf16.gmra.mxu0 %vm335_vm1, %v1153_v16  ;;  %1008 = vmatmul.mubr.msk.bf16.gmra.mxu1 %vm335_vm1, %v1154_v17 }
  0x4c   : > { %493 = vmatprep.mubr.bf16.mxu0 %v1235_v3  ;;  %573 = vmatprep.mubr.bf16.mxu1 %v1235_v3 }
  0x53   : > { %1001 = vmatmul.mubr.msk.bf16.gmra.mxu0 %vm335_vm1, %v1155_v18  ;;  %1009 = vmatmul.mubr.msk.bf16.gmra.mxu1 %vm335_vm1, %v1156_v19 }
  0xdb   : > { %v425_v27 = vpop.f32.mrf.mxu0  ;;  %v505_v29 = vpop.f32.mrf.mxu1 }
  0xdc   : > { %v426_v28 = vadd.f32 %v425_v27, %v1359_v25  ;;  %v506_v30 = vadd.f32 %v505_v29, %v1359_v25 }
  0xdd   : > { %v427_v31 = vpop.f32.mrf.mxu0  ;;  %v507_v33 = vpop.f32.mrf.mxu1 }
  0xde   : > { %v428_v32 = vadd.f32 %v427_v31, %v1361_v26  ;;  %v508_v34 = vadd.f32 %v507_v33, %v1361_v26  ;;  %v584_v36 = vmax.f32 %v426_v28, 0.0  ;;  %v616_v40 = vmax.f32 %v506_v30, 0.0 }
  0xdf   : > { %v429_v35 = vpop.f32.mrf.mxu0  ;;  %v509_v39 = vpop.f32.mrf.mxu1 }
  0xe0   : > { %v585_v37 = vmax.f32 %v428_v32, 0.0  ;;  %v430_v38 = vadd.f32 %v429_v35, %v1359_v25  ;;  %v617_v41 = vmax.f32 %v508_v34, 0.0  ;;  %v510_v42 = vadd.f32 %v509_v39, %v1359_v25 }
  0xe1   : > { %v431_v43 = vpop.f32.mrf.mxu0  ;;  %v511_v46 = vpop.f32.mrf.mxu1 }
  0xe2   : > { %v1048_v44 = vpack.c.bf16 %v585_v37, %v584_v36  ;;  %v432_v45 = vadd.f32 %v431_v43, %v1361_v26  ;;  %v1064_v47 = vpack.c.bf16 %v617_v41, %v616_v40  ;;  %v512_v48 = vadd.f32 %v511_v46, %v1361_v26 }
  0xe3   : > { %v435_v49 = vpop.f32.mrf.mxu0  ;;  %v586_v50 = vmax.f32 %v430_v38, 0.0  ;;  %v515_v53 = vpop.f32.mrf.mxu1  ;;  %v618_v54 = vmax.f32 %v510_v42, 0.0 }
  0xe4   : > { %840 = vst [vmem:[%s1374_s10] sm:$0xff] %v1048_v44  ;;  %v587_v51 = vmax.f32 %v432_v45, 0.0  ;;  %v436_v52 = vadd.f32 %v435_v49, %v1359_v25  ;;  %856 = vst [vmem:[%s1374_s10 + $0x80] sm:$0xff] %v1064_v47  ;;  %v619_v55 = vmax.f32 %v512_v48, 0.0  ;;  %v516_v56 = vadd.f32 %v515_v53, %v1359_v25 }
  0xe5   : > { %v437_v57 = vpop.f32.mrf.mxu0  ;;  %v517_v60 = vpop.f32.mrf.mxu1 }
  0xe6   : > { %v1049_v58 = vpack.c.bf16 %v587_v51, %v586_v50  ;;  %v438_v59 = vadd.f32 %v437_v57, %v1361_v26  ;;  %v1065_v61 = vpack.c.bf16 %v619_v55, %v618_v54  ;;  %v518_v62 = vadd.f32 %v517_v60, %v1361_v26 }
  0xe7   : > { %v439_v63 = vpop.f32.mrf.mxu0  ;;  %v588_v0 = vmax.f32 %v436_v52, 0.0  ;;  %v519_v3 = vpop.f32.mrf.mxu1  ;;  %v620_v4 = vmax.f32 %v516_v56, 0.0 }
  0xe8   : > { %841 = vst [vmem:[%s1374_s10 + $0x8] sm:$0xff] %v1049_v58  ;;  %v589_v1 = vmax.f32 %v438_v59, 0.0  ;;  %v440_v2 = vadd.f32 %v439_v63, %v1359_v25  ;;  %857 = vst [vmem:[%s1374_s10 + $0x88] sm:$0xff] %v1065_v61  ;;  %v621_v5 = vmax.f32 %v518_v62, 0.0  ;;  %v520_v6 = vadd.f32 %v519_v3, %v1359_v25 }
  0xe9   : > { %v441_v7 = vpop.f32.mrf.mxu0  ;;  %v521_v10 = vpop.f32.mrf.mxu1 }
  0xea   : > { %v1050_v8 = vpack.c.bf16 %v589_v1, %v588_v0  ;;  %v442_v9 = vadd.f32 %v441_v7, %v1361_v26  ;;  %v1066_v11 = vpack.c.bf16 %v621_v5, %v620_v4  ;;  %v522_v12 = vadd.f32 %v521_v10, %v1361_v26 }
  0xeb   : > { %v445_v13 = vpop.f32.mrf.mxu0  ;;  %v590_v14 = vmax.f32 %v440_v2, 0.0  ;;  %v525_v17 = vpop.f32.mrf.mxu1  ;;  %v622_v18 = vmax.f32 %v520_v6, 0.0 }
  0xec   : > { %842 = vst [vmem:[%s1374_s10 + $0x10] sm:$0xff] %v1050_v8  ;;  %v591_v15 = vmax.f32 %v442_v9, 0.0  ;;  %v446_v16 = vadd.f32 %v445_v13, %v1359_v25  ;;  %858 = vst [vmem:[%s1374_s10 + $0x90] sm:$0xff] %v1066_v11  ;;  %v623_v19 = vmax.f32 %v522_v12, 0.0  ;;  %v526_v20 = vadd.f32 %v525_v17, %v1359_v25 }
  0xed   : > { %v447_v21 = vpop.f32.mrf.mxu0  ;;  %v527_v24 = vpop.f32.mrf.mxu1 }
  0xee   : > { %v1051_v22 = vpack.c.bf16 %v591_v15, %v590_v14  ;;  %v448_v23 = vadd.f32 %v447_v21, %v1361_v26  ;;  %v1067_v27 = vpack.c.bf16 %v623_v19, %v622_v18  ;;  %v528_v28 = vadd.f32 %v527_v24, %v1361_v26 }
  0xef   : > { %v449_v29 = vpop.f32.mrf.mxu0  ;;  %v592_v30 = vmax.f32 %v446_v16, 0.0  ;;  %v529_v33 = vpop.f32.mrf.mxu1  ;;  %v624_v34 = vmax.f32 %v526_v20, 0.0 }
  0xf0   : > { %843 = vst [vmem:[%s1374_s10 + $0x18] sm:$0xff] %v1051_v22  ;;  %v593_v31 = vmax.f32 %v448_v23, 0.0  ;;  %v450_v32 = vadd.f32 %v449_v29, %v1359_v25  ;;  %859 = vst [vmem:[%s1374_s10 + $0x98] sm:$0xff] %v1067_v27  ;;  %v625_v35 = vmax.f32 %v528_v28, 0.0  ;;  %v530_v36 = vadd.f32 %v529_v33, %v1359_v25 }
  0xf1   : > { %v451_v37 = vpop.f32.mrf.mxu0  ;;  %v531_v40 = vpop.f32.mrf.mxu1 }
  0xf2   : > { %v1052_v38 = vpack.c.bf16 %v593_v31, %v592_v30  ;;  %v452_v39 = vadd.f32 %v451_v37, %v1361_v26  ;;  %v1068_v41 = vpack.c.bf16 %v625_v35, %v624_v34  ;;  %v532_v42 = vadd.f32 %v531_v40, %v1361_v26 }
  0xf3   : > { %v455_v43 = vpop.f32.mrf.mxu0  ;;  %v594_v44 = vmax.f32 %v450_v32, 0.0  ;;  %v535_v47 = vpop.f32.mrf.mxu1  ;;  %v626_v48 = vmax.f32 %v530_v36, 0.0 }
  0xf4   : > { %844 = vst [vmem:[%s1374_s10 + $0x20] sm:$0xff] %v1052_v38  ;;  %v595_v45 = vmax.f32 %v452_v39, 0.0  ;;  %v456_v46 = vadd.f32 %v455_v43, %v1359_v25  ;;  %860 = vst [vmem:[%s1374_s10 + $0xa0] sm:$0xff] %v1068_v41  ;;  %v627_v49 = vmax.f32 %v532_v42, 0.0  ;;  %v536_v50 = vadd.f32 %v535_v47, %v1359_v25 }
  0xf5   : > { %v457_v51 = vpop.f32.mrf.mxu0  ;;  %v537_v54 = vpop.f32.mrf.mxu1 }
  0xf6   : > { %v1053_v52 = vpack.c.bf16 %v595_v45, %v594_v44  ;;  %v458_v53 = vadd.f32 %v457_v51, %v1361_v26  ;;  %v1069_v55 = vpack.c.bf16 %v627_v49, %v626_v48  ;;  %v538_v56 = vadd.f32 %v537_v54, %v1361_v26 }
  0xf7   : > { %v459_v57 = vpop.f32.mrf.mxu0  ;;  %v596_v58 = vmax.f32 %v456_v46, 0.0  ;;  %v539_v61 = vpop.f32.mrf.mxu1  ;;  %v628_v62 = vmax.f32 %v536_v50, 0.0 }
  0xf8   : > { %845 = vst [vmem:[%s1374_s10 + $0x28] sm:$0xff] %v1053_v52  ;;  %v597_v59 = vmax.f32 %v458_v53, 0.0  ;;  %v460_v60 = vadd.f32 %v459_v57, %v1359_v25  ;;  %861 = vst [vmem:[%s1374_s10 + $0xa8] sm:$0xff] %v1069_v55  ;;  %v629_v63 = vmax.f32 %v538_v56, 0.0  ;;  %v540_v0 = vadd.f32 %v539_v61, %v1359_v25 }
  0xf9   : > { %v461_v1 = vpop.f32.mrf.mxu0  ;;  %v541_v4 = vpop.f32.mrf.mxu1 }
  0xfa   : > { %v1054_v2 = vpack.c.bf16 %v597_v59, %v596_v58  ;;  %v462_v3 = vadd.f32 %v461_v1, %v1361_v26  ;;  %v1070_v5 = vpack.c.bf16 %v629_v63, %v628_v62  ;;  %v542_v6 = vadd.f32 %v541_v4, %v1361_v26 }
  0xfb   : > { %v465_v7 = vpop.f32.mrf.mxu0  ;;  %v598_v8 = vmax.f32 %v460_v60, 0.0  ;;  %v545_v11 = vpop.f32.mrf.mxu1  ;;  %v630_v12 = vmax.f32 %v540_v0, 0.0 }
  0xfc   : > { %846 = vst [vmem:[%s1374_s10 + $0x30] sm:$0xff] %v1054_v2  ;;  %v599_v9 = vmax.f32 %v462_v3, 0.0  ;;  %v466_v10 = vadd.f32 %v465_v7, %v1359_v25  ;;  %862 = vst [vmem:[%s1374_s10 + $0xb0] sm:$0xff] %v1070_v5  ;;  %v631_v13 = vmax.f32 %v542_v6, 0.0  ;;  %v546_v14 = vadd.f32 %v545_v11, %v1359_v25 }
  0xfd   : > { %v467_v15 = vpop.f32.mrf.mxu0  ;;  %v547_v18 = vpop.f32.mrf.mxu1 }
  0xfe   : > { %v1055_v16 = vpack.c.bf16 %v599_v9, %v598_v8  ;;  %v468_v17 = vadd.f32 %v467_v15, %v1361_v26  ;;  %v1071_v19 = vpack.c.bf16 %v631_v13, %v630_v12  ;;  %v548_v20 = vadd.f32 %v547_v18, %v1361_v26 }
  0xff   : > { %v469_v21 = vpop.f32.mrf.mxu0  ;;  %v600_v22 = vmax.f32 %v466_v10, 0.0  ;;  %v549_v27 = vpop.f32.mrf.mxu1  ;;  %v632_v28 = vmax.f32 %v546_v14, 0.0 }
 0x100   : > { %847 = vst [vmem:[%s1374_s10 + $0x38] sm:$0xff] %v1055_v16  ;;  %v601_v23 = vmax.f32 %v468_v17, 0.0  ;;  %v470_v24 = vadd.f32 %v469_v21, %v1359_v25  ;;  %863 = vst [vmem:[%s1374_s10 + $0xb8] sm:$0xff] %v1071_v19  ;;  %v633_v29 = vmax.f32 %v548_v20, 0.0  ;;  %v550_v30 = vadd.f32 %v549_v27, %v1359_v25 }
 0x101   : > { %v471_v31 = vpop.f32.mrf.mxu0  ;;  %v551_v34 = vpop.f32.mrf.mxu1 }
 0x102   : > { %v1056_v32 = vpack.c.bf16 %v601_v23, %v600_v22  ;;  %v472_v33 = vadd.f32 %v471_v31, %v1361_v26  ;;  %v1072_v35 = vpack.c.bf16 %v633_v29, %v632_v28  ;;  %v552_v36 = vadd.f32 %v551_v34, %v1361_v26 }
 0x103   : > { %v475_v37 = vpop.f32.mrf.mxu0  ;;  %v602_v38 = vmax.f32 %v470_v24, 0.0  ;;  %v555_v41 = vpop.f32.mrf.mxu1  ;;  %v634_v42 = vmax.f32 %v550_v30, 0.0 }
 0x104   : > { %848 = vst [vmem:[%s1374_s10 + $0x40] sm:$0xff] %v1056_v32  ;;  %v603_v39 = vmax.f32 %v472_v33, 0.0  ;;  %v476_v40 = vadd.f32 %v475_v37, %v1359_v25  ;;  %864 = vst [vmem:[%s1374_s10 + $0xc0] sm:$0xff] %v1072_v35  ;;  %v635_v43 = vmax.f32 %v552_v36, 0.0  ;;  %v556_v44 = vadd.f32 %v555_v41, %v1359_v25 }
 0x105   : > { %v477_v45 = vpop.f32.mrf.mxu0  ;;  %v557_v48 = vpop.f32.mrf.mxu1 }
 0x106   : > { %v1057_v46 = vpack.c.bf16 %v603_v39, %v602_v38  ;;  %v478_v47 = vadd.f32 %v477_v45, %v1361_v26  ;;  %v1073_v49 = vpack.c.bf16 %v635_v43, %v634_v42  ;;  %v558_v50 = vadd.f32 %v557_v48, %v1361_v26 }
 0x107   : > { %v479_v51 = vpop.f32.mrf.mxu0  ;;  %v604_v52 = vmax.f32 %v476_v40, 0.0  ;;  %v559_v55 = vpop.f32.mrf.mxu1  ;;  %v636_v56 = vmax.f32 %v556_v44, 0.0 }
 0x108   : > { %849 = vst [vmem:[%s1374_s10 + $0x48] sm:$0xff] %v1057_v46  ;;  %v605_v53 = vmax.f32 %v478_v47, 0.0  ;;  %v480_v54 = vadd.f32 %v479_v51, %v1359_v25  ;;  %865 = vst [vmem:[%s1374_s10 + $0xc8] sm:$0xff] %v1073_v49  ;;  %v637_v57 = vmax.f32 %v558_v50, 0.0  ;;  %v560_v58 = vadd.f32 %v559_v55, %v1359_v25 }
 0x109   : > { %v481_v59 = vpop.f32.mrf.mxu0  ;;  %v561_v62 = vpop.f32.mrf.mxu1 }
 0x10a   : > { %v1058_v60 = vpack.c.bf16 %v605_v53, %v604_v52  ;;  %v482_v61 = vadd.f32 %v481_v59, %v1361_v26  ;;  %v1074_v63 = vpack.c.bf16 %v637_v57, %v636_v56  ;;  %v562_v0 = vadd.f32 %v561_v62, %v1361_v26 }
 0x10b   : > { %v485_v1 = vpop.f32.mrf.mxu0  ;;  %v606_v2 = vmax.f32 %v480_v54, 0.0  ;;  %v565_v5 = vpop.f32.mrf.mxu1  ;;  %v638_v6 = vmax.f32 %v560_v58, 0.0 }
 0x10c   : > { %850 = vst [vmem:[%s1374_s10 + $0x50] sm:$0xff] %v1058_v60  ;;  %v607_v3 = vmax.f32 %v482_v61, 0.0  ;;  %v486_v4 = vadd.f32 %v485_v1, %v1359_v25  ;;  %866 = vst [vmem:[%s1374_s10 + $0xd0] sm:$0xff] %v1074_v63  ;;  %v639_v7 = vmax.f32 %v562_v0, 0.0  ;;  %v566_v8 = vadd.f32 %v565_v5, %v1359_v25 }
 0x10d   : > { %v487_v9 = vpop.f32.mrf.mxu0  ;;  %v567_v12 = vpop.f32.mrf.mxu1 }
 0x10e   : > { %v1059_v10 = vpack.c.bf16 %v607_v3, %v606_v2  ;;  %v488_v11 = vadd.f32 %v487_v9, %v1361_v26  ;;  %v1075_v13 = vpack.c.bf16 %v639_v7, %v638_v6  ;;  %v568_v14 = vadd.f32 %v567_v12, %v1361_v26 }
 0x10f   : > { %v489_v15 = vpop.f32.mrf.mxu0  ;;  %v608_v16 = vmax.f32 %v486_v4, 0.0  ;;  %v569_v19 = vpop.f32.mrf.mxu1  ;;  %v640_v20 = vmax.f32 %v566_v8, 0.0 }
 0x110   : > { %851 = vst [vmem:[%s1374_s10 + $0x58] sm:$0xff] %v1059_v10  ;;  %v609_v17 = vmax.f32 %v488_v11, 0.0  ;;  %v490_v18 = vadd.f32 %v489_v15, %v1359_v25  ;;  %867 = vst [vmem:[%s1374_s10 + $0xd8] sm:$0xff] %v1075_v13  ;;  %v641_v21 = vmax.f32 %v568_v14, 0.0  ;;  %v570_v22 = vadd.f32 %v569_v19, %v1359_v25 }
 0x111   : > { %v491_v23 = vpop.f32.mrf.mxu0  ;;  %v571_v28 = vpop.f32.mrf.mxu1 }
 0x112   : > { %v1060_v24 = vpack.c.bf16 %v609_v17, %v608_v16  ;;  %v492_v27 = vadd.f32 %v491_v23, %v1361_v26  ;;  %v1076_v29 = vpack.c.bf16 %v641_v21, %v640_v20  ;;  %v572_v30 = vadd.f32 %v571_v28, %v1361_v26 }
 0x113   : > { %v495_v31 = vpop.f32.mrf.mxu0  ;;  %v610_v32 = vmax.f32 %v490_v18, 0.0  ;;  %v575_v35 = vpop.f32.mrf.mxu1  ;;  %v642_v36 = vmax.f32 %v570_v22, 0.0 }
 0x114   : > { %852 = vst [vmem:[%s1374_s10 + $0x60] sm:$0xff] %v1060_v24  ;;  %v611_v33 = vmax.f32 %v492_v27, 0.0  ;;  %v496_v34 = vadd.f32 %v495_v31, %v1359_v25  ;;  %868 = vst [vmem:[%s1374_s10 + $0xe0] sm:$0xff] %v1076_v29  ;;  %v643_v37 = vmax.f32 %v572_v30, 0.0  ;;  %v576_v38 = vadd.f32 %v575_v35, %v1359_v25 }
 0x115   : > { %v497_v39 = vpop.f32.mrf.mxu0  ;;  %v577_v42 = vpop.f32.mrf.mxu1 }
 0x116   : > { %v1061_v40 = vpack.c.bf16 %v611_v33, %v610_v32  ;;  %v498_v41 = vadd.f32 %v497_v39, %v1361_v26  ;;  %v1077_v43 = vpack.c.bf16 %v643_v37, %v642_v36  ;;  %v578_v44 = vadd.f32 %v577_v42, %v1361_v26 }
 0x117   : > { %v499_v45 = vpop.f32.mrf.mxu0  ;;  %v612_v46 = vmax.f32 %v496_v34, 0.0  ;;  %v579_v49 = vpop.f32.mrf.mxu1  ;;  %v644_v50 = vmax.f32 %v576_v38, 0.0 }
 0x118   : > { %853 = vst [vmem:[%s1374_s10 + $0x68] sm:$0xff] %v1061_v40  ;;  %v613_v47 = vmax.f32 %v498_v41, 0.0  ;;  %v500_v48 = vadd.f32 %v499_v45, %v1359_v25  ;;  %869 = vst [vmem:[%s1374_s10 + $0xe8] sm:$0xff] %v1077_v43  ;;  %v645_v51 = vmax.f32 %v578_v44, 0.0  ;;  %v580_v52 = vadd.f32 %v579_v49, %v1359_v25 }
 0x119   : > { %v501_v53 = vpop.f32.mrf.mxu0  ;;  %v581_v56 = vpop.f32.mrf.mxu1 }
 0x11a   : > { %v1062_v54 = vpack.c.bf16 %v613_v47, %v612_v46  ;;  %v502_v55 = vadd.f32 %v501_v53, %v1361_v26  ;;  %v1078_v57 = vpack.c.bf16 %v645_v51, %v644_v50  ;;  %v582_v58 = vadd.f32 %v581_v56, %v1361_v26 }
 0x11b   : > { %v614_v59 = vmax.f32 %v500_v48, 0.0  ;;  %v646_v61 = vmax.f32 %v580_v52, 0.0 }
 0x11c   : > { %854 = vst [vmem:[%s1374_s10 + $0x70] sm:$0xff] %v1062_v54  ;;  %v615_v60 = vmax.f32 %v502_v55, 0.0  ;;  %870 = vst [vmem:[%s1374_s10 + $0xf0] sm:$0xff] %v1078_v57  ;;  %v647_v25 = vmax.f32 %v582_v58, 0.0 }
 0x11e   : > { %v1063_v62 = vpack.c.bf16 %v615_v60, %v614_v59  ;;  %v1079_v26 = vpack.c.bf16 %v647_v25, %v646_v61 }
 0x120   : > { %855 = vst [vmem:[%s1374_s10 + $0x78] sm:$0xff] %v1063_v62  ;;  %871 = vst [vmem:[%s1374_s10 + $0xf8] sm:$0xff] %v1079_v26 }
 0x121   : > { %1170 = shalt.err (!%p1167_p5)
}
 0x122   : > { %s1171_s30 = scalar_lea.hbm %s1467_s23, 4096  ;;  %s1175_s6 = scalar_lea.hbm %s1523_s3, 8192 }
 0x123   : > { %p1172_p6 = scmp.ne.s32.totalorder %s1467_s23, %s1171_s30  ;;  %p1176_p10 = scmp.lt.s32.totalorder %s1467_s23, %s1523_s3 }
 0x124   : > { %p1177_p11 = scmp.lt.s32.totalorder %s1175_s6, %s1171_s30 }
 0x125   : > { %p1173_p7 = pnand %p1172_p6, %p1299_p4 }
 0x126   : > { %p1178_p12 = por %p1177_p11, %p1176_p10 }
 0x127   : > { %p1174_p9 = pneg %p1173_p7 }
 0x129   : > { %p1179_p13 = pnand %p1178_p12, %p1174_p9 }
 0x12b   : > { %1182 = shalt.err (!%p1179_p13)
}
 0x12c   : > { %s1237_s9 = smov 128   ;;  %s1238_s10 = smov 8  }
 0x12d   : > { %1083 = dma.vmem_to_hbm [thread:$0]  (%p1299_p4), %s1469_s18, 4096, %s1467_s23, %s1475_s15, %s1237_s9, %s1237_s9, %s1238_s10  }
 0x12e PF: > { %p1089_p0 = scmp.ge.s32.totalorder %s1233_s17, 2  ;;  %s904_s11 = sand.u32 1, %s1213_s12  }
 0x12f   : > { %s905_s19 = scalar_lea.sflag [#allocation3], %s904_s11 }
 0x130   : > { %p1086_p1 = pnand %p1089_p0, %p1306_p8 }
 0x132   : > { %p1087_p2 = pneg %p1086_p1 }
 0x134   : > { %1208 = dma.done.wait (%p1087_p2), %s905_s19, 4096  }
 0x135   : > { %1210 = vsyncadd (%p1087_p2), %s905_s19, 4294963200  ;;  %s16_s17 = sadd.s32 1, %s1233_s17   ;;  %s1526_s12 = smov %s1217_s13 }
 0x136   : > { %p13_p3 = scmp.ge.s32.totalorder %s16_s17, 4   ;;  %s1527_s13 = smov %s1221_s14 }
 0x137   : > { %s1528_s14 = smov %s1312_s25  ;;  %s1529_s15 = smov %s1229_s16 }
 0x138   : > { %s1530_s16 = smov %s1532_s20  ;;  %15 = sbr.rel (!%p13_p3) target bundleno = 4 (0x4), region = 67 }
 0x13d   :  { %910 = vsyncpa [#allocation3], 1 }
 0x13e   :  { %912 = vsyncpa [#allocation3 + $0x1], 1 }

</bundles_post_ra>
